<compile_context>
chip_gen: v6e
topology: v6e:2x2x1
jax: 0.10.0
libtpu: 0.0.40
codegen_flags: <defaults>
</compile_context>

<pallas_src>
import jax
import jax.numpy as jnp
from jax.experimental import pallas as pl
from jax.experimental.pallas import tpu as pltpu

_LANE = 128


def _round_up(n, m):
    return ((n + m - 1) // m) * m


def _qnet_kernel(x_ref, w1_ref, b1_ref, w2_ref, b2_ref, w3_ref, b3_ref, o_ref):
    x = x_ref[...]

    # Layer 1: Linear + SiLU  (MXU matmul, f32 accumulation)
    h1 = jnp.dot(x, w1_ref[...], preferred_element_type=jnp.float32)
    h1 = h1 + b1_ref[...]
    h1 = h1 * jax.nn.sigmoid(h1)              # SiLU(x) = x * sigmoid(x)

    # Layer 2: Linear + SiLU
    h2 = jnp.dot(h1.astype(w2_ref.dtype), w2_ref[...],
                 preferred_element_type=jnp.float32)
    h2 = h2 + b2_ref[...]
    h2 = h2 * jax.nn.sigmoid(h2)

    # Output head: Linear (no activation), lane-dense (padded to 128) store.
    q = jnp.dot(h2.astype(w3_ref.dtype), w3_ref[...],
                preferred_element_type=jnp.float32)
    q = q + b3_ref[...]
    o_ref[...] = q.astype(o_ref.dtype)


def q_network_forward(x, params, *, tile_b=128, compute_dtype=jnp.float32):
    """Fused MLP forward.

    x: (B, state_dim) f32.
    params: dict of (in, out) weights and (1, out) biases (pre-transposed from
            PyTorch's (out, in) nn.Linear layout).
    tile_b: batch rows per grid step (>=128; use 256-1024 for large RL batches).
    compute_dtype: dtype fed to the MXU (f32 or bf16); accumulation stays f32.
    """
    w1, b1 = params["w1"], params["b1"]
    w2, b2 = params["w2"], params["b2"]
    w3, b3 = params["w3"], params["b3"]

    B, state_dim = x.shape
    l1, l2, action_dim = w1.shape[1], w2.shape[1], w3.shape[1]

    # Pad feature/lane dims to multiples of 128 and batch to a tile multiple.
    l1p = _round_up(l1, _LANE)
    l2p = _round_up(l2, _LANE)
    adp = _round_up(action_dim, _LANE)
    bp = _round_up(max(B, 1), tile_b)

    def pad2(a, rows, cols, dtype):
        out = jnp.zeros((rows, cols), dtype)
        return out.at[: a.shape[0], : a.shape[1]].set(a.astype(dtype))

    xp = pad2(x, bp, state_dim, compute_dtype)
    w1p = pad2(w1, state_dim, l1p, compute_dtype)
    b1p = pad2(b1, 1, l1p, jnp.float32)
    w2p = pad2(w2, l1p, l2p, compute_dtype)
    b2p = pad2(b2, 1, l2p, jnp.float32)
    w3p = pad2(w3, l2p, adp, compute_dtype)
    b3p = pad2(b3, 1, adp, jnp.float32)

    grid = (pl.cdiv(bp, tile_b),)

    # Weights/biases: full-array blocks, same block index every step -> loaded
    # once, VMEM-resident across the whole batch grid.
    def resident(shape):
        return pl.BlockSpec(shape, lambda i: (0, 0))

    itemsize = jnp.dtype(compute_dtype).itemsize
    flops = 2 * bp * (state_dim * l1p + l1p * l2p + l2p * adp)
    transcendentals = bp * (l1p + l2p)  # one sigmoid per hidden activation
    bytes_accessed = (
        xp.size * itemsize
        + (w1p.size + w2p.size + w3p.size) * itemsize
        + (b1p.size + b2p.size + b3p.size) * 4
        + bp * adp * 4
    )

    out = pl.pallas_call(
        _qnet_kernel,
        out_shape=jax.ShapeDtypeStruct((bp, adp), jnp.float32),
        grid=grid,
        in_specs=[
            pl.BlockSpec((tile_b, state_dim), lambda i: (i, 0)),  # batch tile
            resident((state_dim, l1p)),
            resident((1, l1p)),
            resident((l1p, l2p)),
            resident((1, l2p)),
            resident((l2p, adp)),
            resident((1, adp)),
        ],
        out_specs=pl.BlockSpec((tile_b, adp), lambda i: (i, 0)),
        compiler_params=pltpu.CompilerParams(
            dimension_semantics=("parallel",),  # shard batch tiles across TCs (v7x)
        ),
        cost_estimate=pl.CostEstimate(
            flops=flops,
            transcendentals=transcendentals,
            bytes_accessed=bytes_accessed,
        ),
    )(xp, w1p, b1p, w2p, b2p, w3p, b3p)

    # Slice away batch and action padding before any downstream argmax.
    return out[:B, :action_dim]


def init_params(key, state_dim, layer1, layer2, action_dim):
    """Deterministic synthetic parameters, stored as (in, out) / (1, out)."""
    ks = jax.random.split(key, 6)
    scale = 0.1
    return {
        "w1": scale * jax.random.normal(ks[0], (state_dim, layer1), jnp.float32),
        "b1": scale * jax.random.normal(ks[1], (1, layer1), jnp.float32),
        "w2": scale * jax.random.normal(ks[2], (layer1, layer2), jnp.float32),
        "b2": scale * jax.random.normal(ks[3], (1, layer2), jnp.float32),
        "w3": scale * jax.random.normal(ks[4], (layer2, action_dim), jnp.float32),
        "b3": scale * jax.random.normal(ks[5], (1, action_dim), jnp.float32),
    }


def _reference_forward(x, p):
    h1 = x @ p["w1"] + p["b1"]
    h1 = h1 * jax.nn.sigmoid(h1)
    h2 = h1 @ p["w2"] + p["b2"]
    h2 = h2 * jax.nn.sigmoid(h2)
    return h2 @ p["w3"] + p["b3"]


if __name__ == "__main__":
    # Small shapes consistent with the module: batch=8 states of dim 16,
    # hidden layers 32/32, 4 actions.
    B, STATE_DIM, LAYER1, LAYER2, ACTION_DIM = 8, 16, 32, 32, 4

    key = jax.random.PRNGKey(0)
    k_x, k_p = jax.random.split(key)
    x = jax.random.normal(k_x, (B, STATE_DIM), jnp.float32)
    params = init_params(k_p, STATE_DIM, LAYER1, LAYER2, ACTION_DIM)

    # f32 MXU inputs: tight match against the pure-JAX reference.
    q = q_network_forward(x, params, tile_b=128, compute_dtype=jnp.float32)
    q = jax.block_until_ready(q)
    q_ref = _reference_forward(x, params)
    assert q.shape == (B, ACTION_DIM)
    assert jnp.allclose(q, q_ref, atol=1e-5, rtol=1e-5), "mismatch vs JAX reference"

    # bf16 MXU inputs (v6e/v7x fast path): exercise the path, f32 accumulation.
    q_bf16 = q_network_forward(x, params, tile_b=128, compute_dtype=jnp.bfloat16)
    q_bf16 = jax.block_until_ready(q_bf16)
    assert q_bf16.shape == (B, ACTION_DIM)
    assert bool(jnp.all(jnp.isfinite(q_bf16)))

    print("KERNEL_OK")
</pallas_src>

<mosaic_0001>
module attributes {stable_mosaic.version = 11 : i64} {
  func.func @_qnet_kernel(%arg0: i32, %arg1: memref<128x16xf32, #tpu.memory_space<vmem>>, %arg2: memref<16x128xf32, #tpu.memory_space<vmem>>, %arg3: memref<1x128xf32, #tpu.memory_space<vmem>>, %arg4: memref<128x128xf32, #tpu.memory_space<vmem>>, %arg5: memref<1x128xf32, #tpu.memory_space<vmem>>, %arg6: memref<128x128xf32, #tpu.memory_space<vmem>>, %arg7: memref<1x128xf32, #tpu.memory_space<vmem>>, %arg8: memref<128x128xf32, #tpu.memory_space<vmem>>) attributes {dimension_semantics = [#tpu.dimension_semantics<parallel>], iteration_bounds = array<i64: 1>, scalar_prefetch = 0 : i64, scratch_operands = 0 : i64, tpu.core_type = #tpu.core_type<tc>, window_params = [{transform_indices = @transform_0, window_bounds = array<i64: 128, 16>}, {pipeline_mode = #tpu.pipeline_mode<synchronous>, transform_indices = @transform_1, window_bounds = array<i64: 16, 128>}, {pipeline_mode = #tpu.pipeline_mode<synchronous>, transform_indices = @transform_2, window_bounds = array<i64: 1, 128>}, {pipeline_mode = #tpu.pipeline_mode<synchronous>, transform_indices = @transform_3, window_bounds = array<i64: 128, 128>}, {pipeline_mode = #tpu.pipeline_mode<synchronous>, transform_indices = @transform_4, window_bounds = array<i64: 1, 128>}, {pipeline_mode = #tpu.pipeline_mode<synchronous>, transform_indices = @transform_5, window_bounds = array<i64: 128, 128>}, {pipeline_mode = #tpu.pipeline_mode<synchronous>, transform_indices = @transform_6, window_bounds = array<i64: 1, 128>}, {transform_indices = @transform_7, window_bounds = array<i64: 128, 128>}]} {
    %c0 = arith.constant 0 : index
    %c0_0 = arith.constant 0 : index
    %0 = vector.load %arg1[%c0, %c0_0] : memref<128x16xf32, #tpu.memory_space<vmem>>, vector<128x16xf32>
    %c0_1 = arith.constant 0 : index
    %c0_2 = arith.constant 0 : index
    %1 = vector.load %arg2[%c0_1, %c0_2] : memref<16x128xf32, #tpu.memory_space<vmem>>, vector<16x128xf32>
    %cst = arith.constant dense<0.000000e+00> : vector<128x128xf32>
    %2 = tpu.matmul %0, %1, %cst {dimension_numbers = #tpu.dot_dimension_numbers<[1], [0], [0], [1], [0, 0, 1, 1], [], []>} : vector<128x16xf32>, vector<16x128xf32>, vector<128x128xf32> -> vector<128x128xf32>
    %c0_3 = arith.constant 0 : index
    %c0_4 = arith.constant 0 : index
    %3 = vector.load %arg3[%c0_3, %c0_4] : memref<1x128xf32, #tpu.memory_space<vmem>>, vector<1x128xf32>
    %4 = vector.broadcast %3 : vector<1x128xf32> to vector<128x128xf32>
    %5 = arith.addf %2, %4 : vector<128x128xf32>
    %6 = arith.negf %5 : vector<128x128xf32>
    %7 = math.exp %6 : vector<128x128xf32>
    %cst_5 = arith.constant 1.000000e+00 : f32
    %8 = vector.broadcast %cst_5 : f32 to vector<128x128xf32>
    %9 = arith.addf %8, %7 : vector<128x128xf32>
    %10 = arith.divf %8, %9 : vector<128x128xf32>
    %11 = arith.mulf %5, %10 : vector<128x128xf32>
    %c0_6 = arith.constant 0 : index
    %c0_7 = arith.constant 0 : index
    %12 = vector.load %arg4[%c0_6, %c0_7] : memref<128x128xf32, #tpu.memory_space<vmem>>, vector<128x128xf32>
    %cst_8 = arith.constant dense<0.000000e+00> : vector<128x128xf32>
    %13 = tpu.matmul %11, %12, %cst_8 {dimension_numbers = #tpu.dot_dimension_numbers<[1], [0], [0], [1], [0, 0, 1, 1], [], []>} : vector<128x128xf32>, vector<128x128xf32>, vector<128x128xf32> -> vector<128x128xf32>
    %c0_9 = arith.constant 0 : index
    %c0_10 = arith.constant 0 : index
    %14 = vector.load %arg5[%c0_9, %c0_10] : memref<1x128xf32, #tpu.memory_space<vmem>>, vector<1x128xf32>
    %15 = vector.broadcast %14 : vector<1x128xf32> to vector<128x128xf32>
    %16 = arith.addf %13, %15 : vector<128x128xf32>
    %17 = arith.negf %16 : vector<128x128xf32>
    %18 = math.exp %17 : vector<128x128xf32>
    %cst_11 = arith.constant 1.000000e+00 : f32
    %19 = vector.broadcast %cst_11 : f32 to vector<128x128xf32>
    %20 = arith.addf %19, %18 : vector<128x128xf32>
    %21 = arith.divf %19, %20 : vector<128x128xf32>
    %22 = arith.mulf %16, %21 : vector<128x128xf32>
    %c0_12 = arith.constant 0 : index
    %c0_13 = arith.constant 0 : index
    %23 = vector.load %arg6[%c0_12, %c0_13] : memref<128x128xf32, #tpu.memory_space<vmem>>, vector<128x128xf32>
    %cst_14 = arith.constant dense<0.000000e+00> : vector<128x128xf32>
    %24 = tpu.matmul %22, %23, %cst_14 {dimension_numbers = #tpu.dot_dimension_numbers<[1], [0], [0], [1], [0, 0, 1, 1], [], []>} : vector<128x128xf32>, vector<128x128xf32>, vector<128x128xf32> -> vector<128x128xf32>
    %c0_15 = arith.constant 0 : index
    %c0_16 = arith.constant 0 : index
    %25 = vector.load %arg7[%c0_15, %c0_16] : memref<1x128xf32, #tpu.memory_space<vmem>>, vector<1x128xf32>
    %26 = vector.broadcast %25 : vector<1x128xf32> to vector<128x128xf32>
    %27 = arith.addf %24, %26 : vector<128x128xf32>
    %c0_17 = arith.constant 0 : index
    %c0_18 = arith.constant 0 : index
    %28 = vector.load %arg8[%c0_17, %c0_18] : memref<128x128xf32, #tpu.memory_space<vmem>>, vector<128x128xf32>
    tpu.vector_store %arg8[%c0_17, %c0_18], %27 {strides = array<i32>} : memref<128x128xf32, #tpu.memory_space<vmem>>, vector<128x128xf32>,
    return
  }
  func.func @transform_0(%arg0: i32) -> (i32, i32) {
    %c0_i32 = arith.constant 0 : i32
    %c0_i32_0 = arith.constant 0 : i32
    return %arg0, %c0_i32 : i32, i32
  }
  func.func @transform_1(%arg0: i32) -> (i32, i32) {
    %c0_i32 = arith.constant 0 : i32
    %c0_i32_0 = arith.constant 0 : i32
    %c0_i32_1 = arith.constant 0 : i32
    return %c0_i32, %c0_i32_0 : i32, i32
  }
  func.func @transform_2(%arg0: i32) -> (i32, i32) {
    %c0_i32 = arith.constant 0 : i32
    %c0_i32_0 = arith.constant 0 : i32
    %c0_i32_1 = arith.constant 0 : i32
    return %c0_i32, %c0_i32_0 : i32, i32
  }
  func.func @transform_3(%arg0: i32) -> (i32, i32) {
    %c0_i32 = arith.constant 0 : i32
    %c0_i32_0 = arith.constant 0 : i32
    %c0_i32_1 = arith.constant 0 : i32
    return %c0_i32, %c0_i32_0 : i32, i32
  }
  func.func @transform_4(%arg0: i32) -> (i32, i32) {
    %c0_i32 = arith.constant 0 : i32
    %c0_i32_0 = arith.constant 0 : i32
    %c0_i32_1 = arith.constant 0 : i32
    return %c0_i32, %c0_i32_0 : i32, i32
  }
  func.func @transform_5(%arg0: i32) -> (i32, i32) {
    %c0_i32 = arith.constant 0 : i32
    %c0_i32_0 = arith.constant 0 : i32
    %c0_i32_1 = arith.constant 0 : i32
    return %c0_i32, %c0_i32_0 : i32, i32
  }
  func.func @transform_6(%arg0: i32) -> (i32, i32) {
    %c0_i32 = arith.constant 0 : i32
    %c0_i32_0 = arith.constant 0 : i32
    %c0_i32_1 = arith.constant 0 : i32
    return %c0_i32, %c0_i32_0 : i32, i32
  }
  func.func @transform_7(%arg0: i32) -> (i32, i32) {
    %c0_i32 = arith.constant 0 : i32
    %c0_i32_0 = arith.constant 0 : i32
    return %arg0, %c0_i32 : i32, i32
  }
}

</mosaic_0001>

<bundles_post_ra>
// kernel: tpu_custom_call.1
= control target key start
LH: loop header
LB: loop body
LE: loop exit
PB: predicated region body
PF: predicated region fallthrough
CT: control target
= control target key end

     0   :  { %12 = vsyncpa [#allocation3], 0  ;;  %s1649_s0 = inlined_call_operand.vmem [shape: f32[128,16], index: 0, kind: input, shape index: {}]   ;;  %s1650_s1 = inlined_call_operand.vmem [shape: f32[16,128], index: 1, kind: input, shape index: {}]   ;;  %s1651_s2 = inlined_call_operand.vmem [shape: f32[1,128], index: 2, kind: input, shape index: {}]   ;;  %s1652_s3 = inlined_call_operand.vmem [shape: f32[128,128], index: 3, kind: input, shape index: {}]   ;;  %s1653_s4 = inlined_call_operand.vmem [shape: f32[1,128], index: 4, kind: input, shape index: {}]   ;;  %s1654_s5 = inlined_call_operand.hbm [shape: f32[128,128], index: 5, kind: input, shape index: {}]   ;;  %s1655_s6 = inlined_call_operand.vmem [shape: f32[1,128], index: 6, kind: input, shape index: {}]   ;;  %s1656_s7 = inlined_call_operand.hbm [shape: f32[128,128], index: 7, kind: output, shape index: {}]  }
   0x1   :  { %13 = vsyncpa [#allocation4], 0  ;;  %s1302_s24 = smov [#allocation2]  }
   0x2   :  { %s29_s25 = sshll.u32 %s1302_s24, 4  ;;  %s30_s25 = int_to_ptr.vmem [resolvable:$true] %s29_s25 }
   0x3   :  { %s1266_s26 = scalar_lea.vmem %s30_s25, 2048  ;;  %p1271_p1 = scmp.lt.s32.totalorder %s30_s25, %s30_s25 }
   0x4   :  { %p1267_p0 = scmp.ne.s32.totalorder %s30_s25, %s1266_s26  ;;  %p1272_p2 = scmp.lt.s32.totalorder %s1266_s26, %s1266_s26 }
   0x6   :  { %p1273_p3 = por %p1272_p2, %p1271_p1 }
   0x8   :  { %p1274_p4 = pnand %p1273_p3, %p1267_p0 }
   0xa   :  { %1277 = shalt.err (!%p1274_p4)
}
   0xb   :  { %s1303_s27 = smov 128   ;;  %s1304_s28 = smov 8  }
   0xc   :  { %35 = dma.hbm_to_vmem [thread:$0]  %s1654_s5, 2048, %s30_s25, [#allocation3], %s1303_s27, %s1303_s27, %s1304_s28  }
   0xd   :  { %1298 = dma.done.wait [#allocation3], 2048  }
   0xe   :  { %1299 = vsyncadd [#allocation3], 4294965248  ;;  %vm66_vm0 = vcmask 130048   ;;  %v58_v0 = vld [vmem:[%s1650_s1 + $0x8] sm:$0xff]  ;;  %v57_v1 = vld [vmem:[%s1650_s1] sm:$0xff] }
   0xf   :  { %v41_v2 = vld [vmem:[%s1649_s0] sm:$0xff]  ;;  %986 = vmatprep.subr.mxu0 %v58_v0  ;;  %v42_v3 = vld [vmem:[%s1649_s0 + $0x8] sm:$0xff]  ;;  %v43_v4 = vld [vmem:[%s1649_s0 + $0x10] sm:$0xff] }
  0x10   :  { %990 = vmatprep.mubr.msk.f32.mxu0 %vm66_vm0, %v41_v2  ;;  %987 = vmatpush3.msra.mxu0 %v58_v0  ;;  %v44_v5 = vld [vmem:[%s1649_s0 + $0x18] sm:$0xff]  ;;  %v45_v6 = vld [vmem:[%s1649_s0 + $0x20] sm:$0xff]  ;;  %v46_v7 = vld [vmem:[%s1649_s0 + $0x28] sm:$0xff] }
  0x11   :  { %988 = vmatprep.subr.mxu0 %v57_v1  ;;  %v47_v8 = vld [vmem:[%s1649_s0 + $0x30] sm:$0xff]  ;;  %v48_v9 = vld [vmem:[%s1649_s0 + $0x38] sm:$0xff]  ;;  %v49_v10 = vld [vmem:[%s1649_s0 + $0x40] sm:$0xff] }
  0x12   :  { %989 = vmatpush3.msra.mxu0 %v57_v1  ;;  %v50_v11 = vld [vmem:[%s1649_s0 + $0x48] sm:$0xff]  ;;  %v51_v12 = vld [vmem:[%s1649_s0 + $0x50] sm:$0xff]  ;;  %v52_v13 = vld [vmem:[%s1649_s0 + $0x58] sm:$0xff] }
  0x13   :  { %991 = vmatmul.mubr.msk.f32.vlgmr.msra.gmra.mxu0 %vm66_vm0, %v42_v3  ;;  %v53_v14 = vld [vmem:[%s1649_s0 + $0x60] sm:$0xff]  ;;  %v54_v15 = vld [vmem:[%s1649_s0 + $0x68] sm:$0xff]  ;;  %v55_v16 = vld [vmem:[%s1649_s0 + $0x70] sm:$0xff] }
  0x14   :  { %993 = vmatprep.mubr.msk.f32.mxu0 %vm66_vm0, %v43_v4  ;;  %v56_v17 = vld [vmem:[%s1649_s0 + $0x78] sm:$0xff]  ;;  %v386_v19 = vld [vmem:[%s1652_s3 + $0x70] sm:$0xff]  ;;  %v385_v20 = vld [vmem:[%s1652_s3 + $0x68] sm:$0xff] }
  0x15   :  { %v387_v18 = vld [vmem:[%s1652_s3 + $0x78] sm:$0xff]  ;;  %v384_v21 = vld [vmem:[%s1652_s3 + $0x60] sm:$0xff]  ;;  %v382_v23 = vld [vmem:[%s1652_s3 + $0x50] sm:$0xff] }
  0x16   :  { %1014 = vmatprep.subr.mxu1 %v387_v18  ;;  %v383_v22 = vld [vmem:[%s1652_s3 + $0x58] sm:$0xff]  ;;  %v381_v24 = vld [vmem:[%s1652_s3 + $0x48] sm:$0xff]  ;;  %v380_v25 = vld [vmem:[%s1652_s3 + $0x40] sm:$0xff] }
  0x17   :  { %994 = vmatmul.mubr.msk.f32.gmra.mxu0 %vm66_vm0, %v44_v5  ;;  %1015 = vmatpush3.msra.mxu1 %v387_v18  ;;  %v379_v26 = vld [vmem:[%s1652_s3 + $0x38] sm:$0xff]  ;;  %v378_v27 = vld [vmem:[%s1652_s3 + $0x30] sm:$0xff]  ;;  %v377_v28 = vld [vmem:[%s1652_s3 + $0x28] sm:$0xff] }
  0x18   :  { %996 = vmatprep.mubr.msk.f32.mxu0 %vm66_vm0, %v45_v6  ;;  %1016 = vmatprep.subr.mxu1 %v386_v19  ;;  %v376_v29 = vld [vmem:[%s1652_s3 + $0x20] sm:$0xff]  ;;  %v375_v30 = vld [vmem:[%s1652_s3 + $0x18] sm:$0xff]  ;;  %v374_v31 = vld [vmem:[%s1652_s3 + $0x10] sm:$0xff] }
  0x19   :  { %1017 = vmatpush3.msra.mxu1 %v386_v19  ;;  %v373_v32 = vld [vmem:[%s1652_s3 + $0x8] sm:$0xff]  ;;  %v372_v33 = vld [vmem:[%s1652_s3] sm:$0xff] }
  0x1a   :  { %1018 = vmatprep.subr.mxu1 %v385_v20  ;;  %v1473_v34 = vld [vmem:[%s1651_s2] ss:$0 sm:$0xff] }
  0x1b   :  { %997 = vmatmul.mubr.msk.f32.gmra.mxu0 %vm66_vm0, %v46_v7  ;;  %1019 = vmatpush3.msra.mxu1 %v385_v20 }
  0x1c   :  { %999 = vmatprep.mubr.msk.f32.mxu0 %vm66_vm0, %v47_v8  ;;  %1020 = vmatprep.subr.mxu1 %v384_v21 }
  0x1d   :  { %1021 = vmatpush3.msra.mxu1 %v384_v21 }
  0x1e   :  { %1022 = vmatprep.subr.mxu1 %v383_v22 }
  0x1f   :  { %1000 = vmatmul.mubr.msk.f32.gmra.mxu0 %vm66_vm0, %v48_v9  ;;  %1023 = vmatpush3.msra.mxu1 %v383_v22 }
  0x20   :  { %1002 = vmatprep.mubr.msk.f32.mxu0 %vm66_vm0, %v49_v10  ;;  %1024 = vmatprep.subr.mxu1 %v382_v23 }
  0x21   :  { %1025 = vmatpush3.msra.mxu1 %v382_v23 }
  0x22   :  { %1026 = vmatprep.subr.mxu1 %v381_v24 }
  0x23   :  { %1003 = vmatmul.mubr.msk.f32.gmra.mxu0 %vm66_vm0, %v50_v11  ;;  %1027 = vmatpush3.msra.mxu1 %v381_v24 }
  0x24   :  { %1005 = vmatprep.mubr.msk.f32.mxu0 %vm66_vm0, %v51_v12  ;;  %1028 = vmatprep.subr.mxu1 %v380_v25 }
  0x25   :  { %1029 = vmatpush3.msra.mxu1 %v380_v25 }
  0x26   :  { %1030 = vmatprep.subr.mxu1 %v379_v26 }
  0x27   :  { %1006 = vmatmul.mubr.msk.f32.gmra.mxu0 %vm66_vm0, %v52_v13  ;;  %1031 = vmatpush3.msra.mxu1 %v379_v26 }
  0x28   :  { %1008 = vmatprep.mubr.msk.f32.mxu0 %vm66_vm0, %v53_v14  ;;  %1032 = vmatprep.subr.mxu1 %v378_v27 }
  0x29   :  { %1033 = vmatpush3.msra.mxu1 %v378_v27 }
  0x2a   :  { %1034 = vmatprep.subr.mxu1 %v377_v28 }
  0x2b   :  { %1009 = vmatmul.mubr.msk.f32.gmra.mxu0 %vm66_vm0, %v54_v15  ;;  %1035 = vmatpush3.msra.mxu1 %v377_v28 }
  0x2c   :  { %1011 = vmatprep.mubr.msk.f32.mxu0 %vm66_vm0, %v55_v16  ;;  %1036 = vmatprep.subr.mxu1 %v376_v29 }
  0x2d   :  { %1037 = vmatpush3.msra.mxu1 %v376_v29 }
  0x2e   :  { %1038 = vmatprep.subr.mxu1 %v375_v30 }
  0x2f   :  { %1012 = vmatmul.mubr.msk.f32.gmra.mxu0 %vm66_vm0, %v56_v17  ;;  %1039 = vmatpush3.msra.mxu1 %v375_v30 }
  0x30   :  { %1040 = vmatprep.subr.mxu1 %v374_v31 }
  0x31   :  { %1041 = vmatpush3.msra.mxu1 %v374_v31 }
  0x32   :  { %1042 = vmatprep.subr.mxu1 %v373_v32 }
  0x33   :  { %1043 = vmatpush3.msra.mxu1 %v373_v32 }
  0x34   :  { %1044 = vmatprep.subr.mxu1 %v372_v33 }
  0x35   :  { %1045 = vmatpush3.msra.mxu1 %v372_v33 }
  0xd3   :  { %v992_v35 = vpop.f32.mrf.mxu0 }
  0xd4   :  { %v1476_v36 = vadd.f32 %v992_v35, %v1473_v34 }
  0xd5   :  { %v181_v37 = vpop.f32.mrf.mxu0 }
  0xd6   :  { %v871_v38 = vmul.f32 -1.442695, %v1476_v36  ;;  %v1480_v39 = vadd.f32 %v1473_v34, %v181_v37 }
  0xd7   :  { %v995_v40 = vpop.f32.mrf.mxu0 }
  0xd8   :  { %1130 = vpow2.f32 %v871_v38  ;;  %v870_v41 = vmul.f32 -1.442695, %v1480_v39  ;;  %v1484_v42 = vadd.f32 %v995_v40, %v1473_v34 }
  0xd9   :  { %v191_v43 = vpop.f32.mrf.mxu0 }
  0xda   :  { %1132 = vpow2.f32 %v870_v41  ;;  %v873_v44 = vmul.f32 -1.442695, %v1484_v42  ;;  %v1488_v45 = vadd.f32 %v1473_v34, %v191_v43 }
  0xdb   :  { %v998_v46 = vpop.f32.mrf.mxu0 }
  0xdc   :  { %1134 = vpow2.f32 %v873_v44  ;;  %v872_v47 = vmul.f32 -1.442695, %v1488_v45  ;;  %v1492_v48 = vadd.f32 %v998_v46, %v1473_v34 }
  0xdd   :  { %v201_v49 = vpop.f32.mrf.mxu0 }
  0xde   :  { %1136 = vpow2.f32 %v872_v47  ;;  %v875_v50 = vmul.f32 -1.442695, %v1492_v48  ;;  %v1496_v51 = vadd.f32 %v1473_v34, %v201_v49 }
  0xdf   :  { %v1001_v52 = vpop.f32.mrf.mxu0 }
  0xe0   :  { %1138 = vpow2.f32 %v875_v50  ;;  %v874_v53 = vmul.f32 -1.442695, %v1496_v51  ;;  %v1500_v54 = vadd.f32 %v1001_v52, %v1473_v34 }
  0xe1   :  { %v211_v55 = vpop.f32.mrf.mxu0 }
  0xe2   :  { %1140 = vpow2.f32 %v874_v53  ;;  %v877_v56 = vmul.f32 -1.442695, %v1500_v54  ;;  %v1504_v57 = vadd.f32 %v1473_v34, %v211_v55 }
  0xe3   :  { %v1004_v58 = vpop.f32.mrf.mxu0 }
  0xe4   :  { %1142 = vpow2.f32 %v877_v56  ;;  %v876_v59 = vmul.f32 -1.442695, %v1504_v57  ;;  %v1508_v60 = vadd.f32 %v1004_v58, %v1473_v34 }
  0xe5   :  { %v1131_v61 = vpop.eup %1130  ;;  %v221_v62 = vpop.f32.mrf.mxu0 }
  0xe6   :  { %v309_v63 = vadd.f32 1.0, %v1131_v61  ;;  %1144 = vpow2.f32 %v876_v59  ;;  %v879_v0 = vmul.f32 -1.442695, %v1508_v60  ;;  %v1512_v1 = vadd.f32 %v1473_v34, %v221_v62 }
  0xe7   :  { %v1133_v2 = vpop.eup %1132  ;;  %v1007_v3 = vpop.f32.mrf.mxu0 }
  0xe8   :  { %1146 = vrcp.f32 %v309_v63  ;;  %v308_v4 = vadd.f32 1.0, %v1133_v2  ;;  %v878_v5 = vmul.f32 -1.442695, %v1512_v1  ;;  %v1516_v6 = vadd.f32 %v1007_v3, %v1473_v34 }
  0xe9   :  { %v1135_v7 = vpop.eup %1134  ;;  %1148 = vpow2.f32 %v879_v0  ;;  %v231_v8 = vpop.f32.mrf.mxu0 }
  0xea   :  { %1150 = vrcp.f32 %v308_v4  ;;  %v311_v9 = vadd.f32 1.0, %v1135_v7  ;;  %v881_v10 = vmul.f32 -1.442695, %v1516_v6  ;;  %v1520_v11 = vadd.f32 %v1473_v34, %v231_v8 }
  0xeb   :  { %v1137_v12 = vpop.eup %1136  ;;  %1152 = vpow2.f32 %v878_v5  ;;  %v1010_v13 = vpop.f32.mrf.mxu0 }
  0xec   :  { %1154 = vrcp.f32 %v311_v9  ;;  %v310_v14 = vadd.f32 1.0, %v1137_v12  ;;  %v880_v15 = vmul.f32 -1.442695, %v1520_v11  ;;  %v1524_v16 = vadd.f32 %v1010_v13, %v1473_v34 }
  0xed   :  { %v1139_v17 = vpop.eup %1138  ;;  %1156 = vpow2.f32 %v881_v10  ;;  %v241_v18 = vpop.f32.mrf.mxu0 }
  0xee   :  { %1158 = vrcp.f32 %v310_v14  ;;  %v313_v19 = vadd.f32 1.0, %v1139_v17  ;;  %v883_v20 = vmul.f32 -1.442695, %v1524_v16  ;;  %v1528_v21 = vadd.f32 %v1473_v34, %v241_v18 }
  0xef   :  { %v1141_v22 = vpop.eup %1140  ;;  %1160 = vpow2.f32 %v880_v15  ;;  %v1013_v23 = vpop.f32.mrf.mxu0 }
  0xf0   :  { %1162 = vrcp.f32 %v313_v19  ;;  %v312_v24 = vadd.f32 1.0, %v1141_v22  ;;  %v882_v25 = vmul.f32 -1.442695, %v1528_v21  ;;  %v1532_v26 = vadd.f32 %v1013_v23, %v1473_v34  ;;  %v665_v23 = vld [vmem:[#allocation2 + $0x68] sm:$0xff] }
  0xf1   :  { %v1143_v27 = vpop.eup %1142  ;;  %1164 = vpow2.f32 %v883_v20  ;;  %v251_v28 = vpop.f32.mrf.mxu0 }
  0xf2   :  { %1166 = vrcp.f32 %v312_v24  ;;  %v315_v29 = vadd.f32 1.0, %v1143_v27  ;;  %v885_v30 = vmul.f32 -1.442695, %v1532_v26  ;;  %v1536_v31 = vadd.f32 %v1473_v34, %v251_v28  ;;  %v662_v24 = vld [vmem:[#allocation2 + $0x50] sm:$0xff]  ;;  %v659_v27 = vld [vmem:[#allocation2 + $0x38] sm:$0xff] }
  0xf3   :  { %v1145_v32 = vpop.eup %1144  ;;  %1168 = vpow2.f32 %v882_v25  ;;  %v661_v25 = vld [vmem:[#allocation2 + $0x48] sm:$0xff]  ;;  %v658_v28 = vld [vmem:[#allocation2 + $0x30] sm:$0xff] }
  0xf4   :  { %1170 = vrcp.f32 %v315_v29  ;;  %v314_v33 = vadd.f32 1.0, %v1145_v32  ;;  %v884_v35 = vmul.f32 -1.442695, %v1536_v31  ;;  %v657_v29 = vld [vmem:[#allocation2 + $0x28] sm:$0xff]  ;;  %v654_v32 = vld [vmem:[#allocation2 + $0x10] sm:$0xff] }
  0xf5   :  { %v1147_v37 = vpop.eup %1146  ;;  %1172 = vpow2.f32 %v885_v30  ;;  %v656_v30 = vld [vmem:[#allocation2 + $0x20] sm:$0xff] }
  0xf6   :  { %v1149_v38 = vpop.eup %1148  ;;  %1174 = vrcp.f32 %v314_v33  ;;  %v357_v34 = vmul.f32 %v1147_v37, %v1476_v36  ;;  %v653_v33 = vld [vmem:[#allocation2 + $0x8] sm:$0xff]  ;;  %v1558_v37 = vld [vmem:[%s1653_s4] ss:$0 sm:$0xff] }
  0xf7   :  { %v1151_v40 = vpop.eup %1150  ;;  %v317_v41 = vadd.f32 1.0, %v1149_v38  ;;  %1176 = vpow2.f32 %v884_v35  ;;  %v652_v35 = vld [vmem:[#allocation2] sm:$0xff] }
  0xf8   :  { %v1153_v43 = vpop.eup %1152  ;;  %v356_v44 = vmul.f32 %v1151_v40, %v1480_v39 }
  0xf9   :  { %v1155_v46 = vpop.eup %1154  ;;  %v316_v47 = vadd.f32 1.0, %v1153_v43  ;;  %1178 = vrcp.f32 %v317_v41 }
  0xfa   :  { %v1157_v49 = vpop.eup %1156  ;;  %1046 = vmatprep.mubr.f32.mxu1 %v356_v44  ;;  %v359_v58 = vmul.f32 %v1155_v46, %v1484_v42 }
  0xfb   :  { %v1159_v50 = vpop.eup %1158  ;;  %1180 = vrcp.f32 %v316_v47  ;;  %v319_v52 = vadd.f32 1.0, %v1157_v49  ;;  %1047 = vmatmul.mubr.f32.vlgmr.msra.gmra.mxu1 %v357_v34 }
  0xfc   :  { %v1161_v53 = vpop.eup %1160  ;;  %v358_v55 = vmul.f32 %v1159_v50, %v1488_v45 }
  0xfd   :  { %v1163_v56 = vpop.eup %1162  ;;  %v318_v59 = vadd.f32 1.0, %v1161_v53  ;;  %1182 = vrcp.f32 %v319_v52 }
  0xfe   :  { %v1165_v61 = vpop.eup %1164  ;;  %1049 = vmatprep.mubr.f32.mxu1 %v358_v55  ;;  %v361_v2 = vmul.f32 %v1163_v56, %v1492_v48 }
  0xff   :  { %v1167_v39 = vpop.eup %1166  ;;  %1184 = vrcp.f32 %v318_v59  ;;  %v321_v36 = vadd.f32 1.0, %v1165_v61  ;;  %1050 = vmatmul.mubr.f32.gmra.mxu1 %v359_v58 }
 0x100   :  { %v1169_v62 = vpop.eup %1168  ;;  %v360_v63 = vmul.f32 %v1167_v39, %v1496_v51 }
 0x101   :  { %v1171_v0 = vpop.eup %1170  ;;  %v320_v3 = vadd.f32 1.0, %v1169_v62  ;;  %1186 = vrcp.f32 %v321_v36 }
 0x102   :  { %v1173_v4 = vpop.eup %1172  ;;  %1052 = vmatprep.mubr.f32.mxu1 %v360_v63  ;;  %v363_v8 = vmul.f32 %v1171_v0, %v1500_v54 }
 0x103   :  { %v1175_v45 = vpop.eup %1174  ;;  %1188 = vrcp.f32 %v320_v3  ;;  %v323_v42 = vadd.f32 1.0, %v1173_v4  ;;  %1053 = vmatmul.mubr.f32.gmra.mxu1 %v361_v2 }
 0x104   :  { %v1177_v5 = vpop.eup %1176  ;;  %v362_v7 = vmul.f32 %v1175_v45, %v1504_v57 }
 0x105   :  { %v322_v9 = vadd.f32 1.0, %v1177_v5  ;;  %1190 = vrcp.f32 %v323_v42 }
 0x106   :  { %1055 = vmatprep.mubr.f32.mxu1 %v362_v7  ;;  %v1179_v51 = vpop.eup %1178 }
 0x107   :  { %1192 = vrcp.f32 %v322_v9  ;;  %1056 = vmatmul.mubr.f32.gmra.mxu1 %v363_v8  ;;  %v365_v12 = vmul.f32 %v1179_v51, %v1508_v60 }
 0x108   :  { %v1181_v48 = vpop.eup %1180 }
 0x109   :  { %v364_v10 = vmul.f32 %v1181_v48, %v1512_v1 }
 0x10a   :  { %v1183_v13 = vpop.eup %1182 }
 0x10b   :  { %1058 = vmatprep.mubr.f32.mxu1 %v364_v10  ;;  %v367_v57 = vmul.f32 %v1183_v13, %v1516_v6  ;;  %v666_v6 = vld [vmem:[#allocation2 + $0x70] sm:$0xff] }
 0x10c   :  { %v1185_v14 = vpop.eup %1184  ;;  %1059 = vmatmul.mubr.f32.gmra.mxu1 %v365_v12 }
 0x10d   :  { %v366_v15 = vmul.f32 %v1185_v14, %v1520_v11  ;;  %v667_v11 = vld [vmem:[#allocation2 + $0x78] sm:$0xff] }
 0x10e   :  { %v1187_v54 = vpop.eup %1186  ;;  %1070 = vmatprep.subr.mxu0 %v667_v11 }
 0x10f   :  { %1061 = vmatprep.mubr.f32.mxu1 %v366_v15  ;;  %v369_v19 = vmul.f32 %v1187_v54, %v1524_v16  ;;  %1071 = vmatpush3.msra.mxu0 %v667_v11  ;;  %v664_v16 = vld [vmem:[#allocation2 + $0x60] sm:$0xff] }
 0x110   :  { %v1189_v17 = vpop.eup %1188  ;;  %1062 = vmatmul.mubr.f32.gmra.mxu1 %v367_v57  ;;  %1072 = vmatprep.subr.mxu0 %v666_v6 }
 0x111   :  { %v368_v18 = vmul.f32 %v1189_v17, %v1528_v21  ;;  %1073 = vmatpush3.msra.mxu0 %v666_v6  ;;  %v663_v21 = vld [vmem:[#allocation2 + $0x58] sm:$0xff] }
 0x112   :  { %v1191_v20 = vpop.eup %1190  ;;  %1074 = vmatprep.subr.mxu0 %v665_v23 }
 0x113   :  { %1064 = vmatprep.mubr.f32.mxu1 %v368_v18  ;;  %v371_v22 = vmul.f32 %v1191_v20, %v1532_v26  ;;  %1075 = vmatpush3.msra.mxu0 %v665_v23  ;;  %v660_v26 = vld [vmem:[#allocation2 + $0x40] sm:$0xff] }
 0x114   :  { %v1193_v1 = vpop.eup %1192  ;;  %1065 = vmatmul.mubr.f32.gmra.mxu1 %v369_v19  ;;  %1076 = vmatprep.subr.mxu0 %v664_v16 }
 0x115   :  { %v370_v60 = vmul.f32 %v1193_v1, %v1536_v31  ;;  %1077 = vmatpush3.msra.mxu0 %v664_v16  ;;  %v655_v31 = vld [vmem:[#allocation2 + $0x18] sm:$0xff] }
 0x116   :  { %1078 = vmatprep.subr.mxu0 %v663_v21 }
 0x117   :  { %1067 = vmatprep.mubr.f32.mxu1 %v370_v60  ;;  %1079 = vmatpush3.msra.mxu0 %v663_v21 }
 0x118   :  { %1068 = vmatmul.mubr.f32.gmra.mxu1 %v371_v22  ;;  %1080 = vmatprep.subr.mxu0 %v662_v24 }
 0x119   :  { %1081 = vmatpush3.msra.mxu0 %v662_v24 }
 0x11a   :  { %1082 = vmatprep.subr.mxu0 %v661_v25 }
 0x11b   :  { %1083 = vmatpush3.msra.mxu0 %v661_v25 }
 0x11c   :  { %1084 = vmatprep.subr.mxu0 %v660_v26 }
 0x11d   :  { %1085 = vmatpush3.msra.mxu0 %v660_v26 }
 0x11e   :  { %1086 = vmatprep.subr.mxu0 %v659_v27 }
 0x11f   :  { %1087 = vmatpush3.msra.mxu0 %v659_v27 }
 0x120   :  { %1088 = vmatprep.subr.mxu0 %v658_v28 }
 0x121   :  { %1089 = vmatpush3.msra.mxu0 %v658_v28 }
 0x122   :  { %1090 = vmatprep.subr.mxu0 %v657_v29 }
 0x123   :  { %1091 = vmatpush3.msra.mxu0 %v657_v29 }
 0x124   :  { %1092 = vmatprep.subr.mxu0 %v656_v30 }
 0x125   :  { %1093 = vmatpush3.msra.mxu0 %v656_v30 }
 0x126   :  { %1094 = vmatprep.subr.mxu0 %v655_v31 }
 0x127   :  { %1095 = vmatpush3.msra.mxu0 %v655_v31 }
 0x128   :  { %1096 = vmatprep.subr.mxu0 %v654_v32 }
 0x129   :  { %1097 = vmatpush3.msra.mxu0 %v654_v32 }
 0x12a   :  { %1098 = vmatprep.subr.mxu0 %v653_v33 }
 0x12b   :  { %1099 = vmatpush3.msra.mxu0 %v653_v33 }
 0x12c   :  { %1100 = vmatprep.subr.mxu0 %v652_v35 }
 0x12d   :  { %1101 = vmatpush3.msra.mxu0 %v652_v35 }
 0x1bb   :  { %v1048_v38 = vpop.f32.mrf.mxu1 }
 0x1bc   :  { %v1561_v40 = vadd.f32 %v1048_v38, %v1558_v37 }
 0x1bd   :  { %v461_v41 = vpop.f32.mrf.mxu1 }
 0x1be   :  { %v888_v43 = vmul.f32 -1.442695, %v1561_v40  ;;  %v1565_v44 = vadd.f32 %v1558_v37, %v461_v41 }
 0x1bf   :  { %v1051_v46 = vpop.f32.mrf.mxu1 }
 0x1c0   :  { %1194 = vpow2.f32 %v888_v43  ;;  %v887_v34 = vmul.f32 -1.442695, %v1565_v44  ;;  %v1569_v47 = vadd.f32 %v1051_v46, %v1558_v37 }
 0x1c1   :  { %v471_v49 = vpop.f32.mrf.mxu1 }
 0x1c2   :  { %1196 = vpow2.f32 %v887_v34  ;;  %v890_v50 = vmul.f32 -1.442695, %v1569_v47  ;;  %v1573_v52 = vadd.f32 %v1558_v37, %v471_v49 }
 0x1c3   :  { %v1054_v53 = vpop.f32.mrf.mxu1 }
 0x1c4   :  { %1198 = vpow2.f32 %v890_v50  ;;  %v889_v55 = vmul.f32 -1.442695, %v1573_v52  ;;  %v1577_v56 = vadd.f32 %v1054_v53, %v1558_v37 }
 0x1c5   :  { %v481_v58 = vpop.f32.mrf.mxu1 }
 0x1c6   :  { %1200 = vpow2.f32 %v889_v55  ;;  %v892_v59 = vmul.f32 -1.442695, %v1577_v56  ;;  %v1581_v61 = vadd.f32 %v1558_v37, %v481_v58 }
 0x1c7   :  { %v1057_v39 = vpop.f32.mrf.mxu1 }
 0x1c8   :  { %1202 = vpow2.f32 %v892_v59  ;;  %v891_v36 = vmul.f32 -1.442695, %v1581_v61  ;;  %v1585_v62 = vadd.f32 %v1057_v39, %v1558_v37 }
 0x1c9   :  { %v491_v63 = vpop.f32.mrf.mxu1 }
 0x1ca   :  { %1204 = vpow2.f32 %v891_v36  ;;  %v894_v0 = vmul.f32 -1.442695, %v1585_v62  ;;  %v1589_v2 = vadd.f32 %v1558_v37, %v491_v63 }
 0x1cc   :  { %1206 = vpow2.f32 %v894_v0  ;;  %v893_v3 = vmul.f32 -1.442695, %v1589_v2  ;;  %v1060_v4 = vpop.f32.mrf.mxu1 }
 0x1cd   :  { %v1195_v45 = vpop.eup %1194  ;;  %v1593_v42 = vadd.f32 %v1060_v4, %v1558_v37 }
 0x1ce   :  { %v589_v5 = vadd.f32 1.0, %v1195_v45  ;;  %1208 = vpow2.f32 %v893_v3  ;;  %v501_v7 = vpop.f32.mrf.mxu1 }
 0x1cf   :  { %v1197_v8 = vpop.eup %1196  ;;  %v896_v9 = vmul.f32 -1.442695, %v1593_v42  ;;  %v1597_v51 = vadd.f32 %v1558_v37, %v501_v7 }
 0x1d0   :  { %1210 = vrcp.f32 %v589_v5  ;;  %v588_v48 = vadd.f32 1.0, %v1197_v8  ;;  %v1063_v10 = vpop.f32.mrf.mxu1 }
 0x1d1   :  { %v1199_v12 = vpop.eup %1198  ;;  %1212 = vpow2.f32 %v896_v9  ;;  %v895_v13 = vmul.f32 -1.442695, %v1597_v51  ;;  %v1601_v14 = vadd.f32 %v1063_v10, %v1558_v37 }
 0x1d2   :  { %1214 = vrcp.f32 %v588_v48  ;;  %v591_v15 = vadd.f32 1.0, %v1199_v12  ;;  %v511_v57 = vpop.f32.mrf.mxu1 }
 0x1d3   :  { %v1201_v54 = vpop.eup %1200  ;;  %1216 = vpow2.f32 %v895_v13  ;;  %v898_v17 = vmul.f32 -1.442695, %v1601_v14  ;;  %v1605_v18 = vadd.f32 %v1558_v37, %v511_v57 }
 0x1d4   :  { %1218 = vrcp.f32 %v591_v15  ;;  %v590_v19 = vadd.f32 1.0, %v1201_v54  ;;  %v1066_v20 = vpop.f32.mrf.mxu1 }
 0x1d5   :  { %v1203_v1 = vpop.eup %1202  ;;  %1220 = vpow2.f32 %v898_v17  ;;  %v897_v60 = vmul.f32 -1.442695, %v1605_v18  ;;  %v1609_v22 = vadd.f32 %v1066_v20, %v1558_v37 }
 0x1d6   :  { %1222 = vrcp.f32 %v590_v19  ;;  %v593_v11 = vadd.f32 1.0, %v1203_v1  ;;  %v521_v6 = vpop.f32.mrf.mxu1 }
 0x1d7   :  { %v1205_v23 = vpop.eup %1204  ;;  %1224 = vpow2.f32 %v897_v60  ;;  %v900_v16 = vmul.f32 -1.442695, %v1609_v22  ;;  %v1613_v21 = vadd.f32 %v1558_v37, %v521_v6 }
 0x1d8   :  { %1226 = vrcp.f32 %v593_v11  ;;  %v592_v24 = vadd.f32 1.0, %v1205_v23  ;;  %v1069_v25 = vpop.f32.mrf.mxu1 }
 0x1d9   :  { %v1207_v26 = vpop.eup %1206  ;;  %1228 = vpow2.f32 %v900_v16  ;;  %v899_v27 = vmul.f32 -1.442695, %v1613_v21  ;;  %v1617_v28 = vadd.f32 %v1069_v25, %v1558_v37 }
 0x1da   :  { %1230 = vrcp.f32 %v592_v24  ;;  %v595_v29 = vadd.f32 1.0, %v1207_v26  ;;  %v531_v30 = vpop.f32.mrf.mxu1 }
 0x1db   :  { %v1209_v31 = vpop.eup %1208  ;;  %1232 = vpow2.f32 %v899_v27  ;;  %v902_v32 = vmul.f32 -1.442695, %v1617_v28  ;;  %v1621_v33 = vadd.f32 %v1558_v37, %v531_v30 }
 0x1dc   :  { %1234 = vrcp.f32 %v595_v29  ;;  %v594_v35 = vadd.f32 1.0, %v1209_v31 }
 0x1dd   :  { %v1211_v38 = vpop.eup %1210  ;;  %1236 = vpow2.f32 %v902_v32  ;;  %v901_v41 = vmul.f32 -1.442695, %v1621_v33 }
 0x1de   :  { %v1213_v43 = vpop.eup %1212  ;;  %1238 = vrcp.f32 %v594_v35  ;;  %v637_v55 = vmul.f32 %v1211_v38, %v1561_v40 }
 0x1df   :  { %v1215_v46 = vpop.eup %1214  ;;  %v597_v34 = vadd.f32 1.0, %v1213_v43  ;;  %1240 = vpow2.f32 %v901_v41 }
 0x1e0   :  { %v1217_v49 = vpop.eup %1216  ;;  %v636_v50 = vmul.f32 %v1215_v46, %v1565_v44 }
 0x1e1   :  { %v1219_v53 = vpop.eup %1218  ;;  %v596_v58 = vadd.f32 1.0, %v1217_v49  ;;  %1242 = vrcp.f32 %v597_v34 }
 0x1e2   :  { %v1221_v37 = vpop.eup %1220  ;;  %1102 = vmatprep.mubr.f32.mxu0 %v636_v50  ;;  %v639_v3 = vmul.f32 %v1219_v53, %v1569_v47 }
 0x1e3   :  { %v1223_v59 = vpop.eup %1222  ;;  %1244 = vrcp.f32 %v596_v58  ;;  %v599_v39 = vadd.f32 1.0, %v1221_v37  ;;  %1103 = vmatmul.mubr.f32.vlgmr.msra.gmra.mxu0 %v637_v55 }
 0x1e4   :  { %v1225_v36 = vpop.eup %1224  ;;  %v638_v63 = vmul.f32 %v1223_v59, %v1573_v52 }
 0x1e5   :  { %v1227_v0 = vpop.eup %1226  ;;  %v598_v4 = vadd.f32 1.0, %v1225_v36  ;;  %1246 = vrcp.f32 %v599_v39 }
 0x1e6   :  { %v1229_v45 = vpop.eup %1228  ;;  %1105 = vmatprep.mubr.f32.mxu0 %v638_v63  ;;  %v641_v9 = vmul.f32 %v1227_v0, %v1577_v56 }
 0x1e7   :  { %v1231_v44 = vpop.eup %1230  ;;  %1248 = vrcp.f32 %v598_v4  ;;  %v601_v40 = vadd.f32 1.0, %v1229_v45  ;;  %1106 = vmatmul.mubr.f32.gmra.mxu0 %v639_v3 }
 0x1e8   :  { %v1233_v5 = vpop.eup %1232  ;;  %v640_v7 = vmul.f32 %v1231_v44, %v1581_v61 }
 0x1e9   :  { %v1235_v8 = vpop.eup %1234  ;;  %v600_v48 = vadd.f32 1.0, %v1233_v5  ;;  %1250 = vrcp.f32 %v601_v40 }
 0x1ea   :  { %v1237_v10 = vpop.eup %1236  ;;  %1108 = vmatprep.mubr.f32.mxu0 %v640_v7  ;;  %v643_v15 = vmul.f32 %v1235_v8, %v1585_v62 }
 0x1eb   :  { %v1239_v52 = vpop.eup %1238  ;;  %1252 = vrcp.f32 %v600_v48  ;;  %v603_v47 = vadd.f32 1.0, %v1237_v10  ;;  %1109 = vmatmul.mubr.f32.gmra.mxu0 %v641_v9 }
 0x1ec   :  { %v1241_v12 = vpop.eup %1240  ;;  %v642_v13 = vmul.f32 %v1239_v52, %v1589_v2 }
 0x1ed   :  { %v602_v57 = vadd.f32 1.0, %v1241_v12  ;;  %1254 = vrcp.f32 %v603_v47 }
 0x1ee   :  { %1111 = vmatprep.mubr.f32.mxu0 %v642_v13  ;;  %v1243_v61 = vpop.eup %1242 }
 0x1ef   :  { %1256 = vrcp.f32 %v602_v57  ;;  %1112 = vmatmul.mubr.f32.gmra.mxu0 %v643_v15  ;;  %v645_v17 = vmul.f32 %v1243_v61, %v1593_v42 }
 0x1f0   :  { %v1245_v56 = vpop.eup %1244 }
 0x1f1   :  { %v644_v54 = vmul.f32 %v1245_v56, %v1597_v51 }
 0x1f2   :  { %v1247_v19 = vpop.eup %1246 }
 0x1f3   :  { %1114 = vmatprep.mubr.f32.mxu0 %v644_v54  ;;  %v647_v2 = vmul.f32 %v1247_v19, %v1601_v14  ;;  %v903_v14 = vld [vmem:[%s1655_s6] ss:$0 sm:$0xff]  ;;  %s1305_s6 = smov [#allocation5]  }
 0x1f4   :  { %v1249_v20 = vpop.eup %1248  ;;  %1115 = vmatmul.mubr.f32.gmra.mxu0 %v645_v17  ;;  %s841_s8 = sshll.u32 %s1305_s6, 4  ;;  %s842_s8 = int_to_ptr.vmem [resolvable:$true] %s841_s8 }
 0x1f5   :  { %v646_v1 = vmul.f32 %v1249_v20, %v1605_v18  ;;  %s1278_s9 = scalar_lea.vmem %s842_s8, 2048  ;;  %p1283_p6 = scmp.lt.s32.totalorder %s842_s8, %s842_s8 }
 0x1f6   :  { %v1251_v62 = vpop.eup %1250  ;;  %p1279_p5 = scmp.ne.s32.totalorder %s842_s8, %s1278_s9  ;;  %p1284_p7 = scmp.lt.s32.totalorder %s1278_s9, %s1278_s9 }
 0x1f7   :  { %1117 = vmatprep.mubr.f32.mxu0 %v646_v1  ;;  %v649_v6 = vmul.f32 %v1251_v62, %v1609_v22 }
 0x1f8   :  { %v1253_v60 = vpop.eup %1252  ;;  %1118 = vmatmul.mubr.f32.gmra.mxu0 %v647_v2  ;;  %p1285_p8 = por %p1284_p7, %p1283_p6 }
 0x1f9   :  { %v648_v11 = vmul.f32 %v1253_v60, %v1613_v21 }
 0x1fa   :  { %v1255_v23 = vpop.eup %1254  ;;  %p1286_p9 = pnand %p1285_p8, %p1279_p5 }
 0x1fb   :  { %1120 = vmatprep.mubr.f32.mxu0 %v648_v11  ;;  %v651_v16 = vmul.f32 %v1255_v23, %v1617_v28 }
 0x1fc   :  { %v1257_v51 = vpop.eup %1256  ;;  %1121 = vmatmul.mubr.f32.gmra.mxu0 %v649_v6 }
 0x1fd   :  { %v650_v42 = vmul.f32 %v1257_v51, %v1621_v33 }
 0x1ff   :  { %1123 = vmatprep.mubr.f32.mxu0 %v650_v42 }
 0x200   :  { %1124 = vmatmul.mubr.f32.gmra.mxu0 %v651_v16 }
 0x2a3   :  { %v1104_v18 = vpop.f32.mrf.mxu0 }
 0x2a4   :  { %v747_v24 = vadd.f32 %v1104_v18, %v903_v14 }
 0x2a5   :  { %v741_v25 = vpop.f32.mrf.mxu0 }
 0x2a6   :  { %821 = vst [vmem:[#allocation5 + $0x8] sm:$0xff] %v747_v24  ;;  %v742_v21 = vadd.f32 %v903_v14, %v741_v25 }
 0x2a7   :  { %v1107_v22 = vpop.f32.mrf.mxu0 }
 0x2a8   :  { %820 = vst [vmem:[#allocation5] sm:$0xff] %v742_v21  ;;  %v757_v26 = vadd.f32 %v1107_v22, %v903_v14 }
 0x2a9   :  { %v751_v27 = vpop.f32.mrf.mxu0 }
 0x2aa   :  { %823 = vst [vmem:[#allocation5 + $0x18] sm:$0xff] %v757_v26  ;;  %v752_v29 = vadd.f32 %v903_v14, %v751_v27 }
 0x2ab   :  { %v1110_v30 = vpop.f32.mrf.mxu0 }
 0x2ac   :  { %822 = vst [vmem:[#allocation5 + $0x10] sm:$0xff] %v752_v29  ;;  %v767_v28 = vadd.f32 %v1110_v30, %v903_v14 }
 0x2ad   :  { %v761_v31 = vpop.f32.mrf.mxu0 }
 0x2ae   :  { %825 = vst [vmem:[#allocation5 + $0x28] sm:$0xff] %v767_v28  ;;  %v762_v32 = vadd.f32 %v903_v14, %v761_v31 }
 0x2af   :  { %v1113_v33 = vpop.f32.mrf.mxu0 }
 0x2b0   :  { %824 = vst [vmem:[#allocation5 + $0x20] sm:$0xff] %v762_v32  ;;  %v777_v35 = vadd.f32 %v1113_v33, %v903_v14 }
 0x2b1   :  { %v771_v38 = vpop.f32.mrf.mxu0 }
 0x2b2   :  { %827 = vst [vmem:[#allocation5 + $0x38] sm:$0xff] %v777_v35  ;;  %v772_v41 = vadd.f32 %v903_v14, %v771_v38 }
 0x2b4   :  { %826 = vst [vmem:[#allocation5 + $0x30] sm:$0xff] %v772_v41  ;;  %v1116_v43 = vpop.f32.mrf.mxu0 }
 0x2b5   :  { %v787_v46 = vadd.f32 %v1116_v43, %v903_v14 }
 0x2b6   :  { %v781_v34 = vpop.f32.mrf.mxu0 }
 0x2b7   :  { %829 = vst [vmem:[#allocation5 + $0x48] sm:$0xff] %v787_v46  ;;  %v782_v49 = vadd.f32 %v903_v14, %v781_v34 }
 0x2b8   :  { %v1119_v50 = vpop.f32.mrf.mxu0 }
 0x2b9   :  { %828 = vst [vmem:[#allocation5 + $0x40] sm:$0xff] %v782_v49  ;;  %v797_v53 = vadd.f32 %v1119_v50, %v903_v14 }
 0x2ba   :  { %v791_v55 = vpop.f32.mrf.mxu0 }
 0x2bb   :  { %831 = vst [vmem:[#allocation5 + $0x58] sm:$0xff] %v797_v53  ;;  %v792_v58 = vadd.f32 %v903_v14, %v791_v55 }
 0x2bc   :  { %v1122_v37 = vpop.f32.mrf.mxu0 }
 0x2bd   :  { %830 = vst [vmem:[#allocation5 + $0x50] sm:$0xff] %v792_v58  ;;  %v807_v59 = vadd.f32 %v1122_v37, %v903_v14 }
 0x2be   :  { %v801_v39 = vpop.f32.mrf.mxu0 }
 0x2bf   :  { %833 = vst [vmem:[#allocation5 + $0x68] sm:$0xff] %v807_v59  ;;  %v802_v36 = vadd.f32 %v903_v14, %v801_v39 }
 0x2c0   :  { %v1125_v63 = vpop.f32.mrf.mxu0 }
 0x2c1   :  { %832 = vst [vmem:[#allocation5 + $0x60] sm:$0xff] %v802_v36  ;;  %v817_v0 = vadd.f32 %v1125_v63, %v903_v14 }
 0x2c2   :  { %v811_v3 = vpop.f32.mrf.mxu0 }
 0x2c3   :  { %835 = vst [vmem:[#allocation5 + $0x78] sm:$0xff] %v817_v0  ;;  %v812_v4 = vadd.f32 %v903_v14, %v811_v3 }
 0x2c5   :  { %834 = vst [vmem:[#allocation5 + $0x70] sm:$0xff] %v812_v4 }
 0x2c6   :  { %1289 = shalt.err (!%p1286_p9)
}
 0x2c7   :  { %847 = dma.vmem_to_hbm [thread:$0]  %s842_s8, 2048, %s1656_s7, [#allocation4], %s1303_s27, %s1303_s27, %s1304_s28  }
 0x2c8   :  { %1300 = dma.done.wait [#allocation4], 2048  }
 0x2c9   :  { %1301 = vsyncadd [#allocation4], 4294965248 }
 0x2ca   :  { %851 = vsyncpa [#allocation3], 1 }
 0x2cb   :  { %852 = vsyncpa [#allocation4], 1 }

</bundles_post_ra>
